<compile_context>
chip_gen: v7x
topology: tpu7x:2x2x1
jax: 0.10.0
libtpu: 0.0.40
codegen_flags: <defaults>
</compile_context>

<pallas_src>
import functools
import math

import jax
import jax.numpy as jnp
from jax.experimental import pallas as pl
from jax.experimental.pallas import tpu as pltpu


def _round_up(x, m):
    return ((x + m - 1) // m) * m


# ----------------------------- Pallas kernel --------------------------------
def _baseline_layer_kernel(xp_ref, w_ref, b_ref, o_ref):
    # out_tile = [x,pos]_tile @ W_fused + b   (single MXU push, f32 accumulation)
    acc = jnp.dot(xp_ref[...], w_ref[...], preferred_element_type=jnp.float32)
    o_ref[...] = (acc + b_ref[...]).astype(o_ref.dtype)


# ------------------------------ Pallas wrapper -------------------------------
@functools.partial(jax.jit, static_argnames=("tile_n",))
def _baseline_layer_pallas(x, pos, w, b, *, tile_n=2048):
    """x: (N, C_in), pos: (N, D).

    w: (K_pad, C_out) fused weight (K_pad = round_up(C_in + D, 8)),
    b: (1, C_out) fused bias.  Returns (N, C_out).
    """
    n = x.shape[0]
    k_raw = x.shape[1] + pos.shape[1]
    k_pad, c_out = w.shape

    # One-time (per call, outside the grid loop) concat + K padding; XLA fuses
    # this with the producers of x/pos.
    xp = jnp.concatenate([x, pos], axis=1)
    if k_pad != k_raw:
        xp = jnp.pad(xp, ((0, 0), (0, k_pad - k_raw)))

    # Balanced row tiling.  Force >=2 grid steps (when possible) so the
    # "parallel" axis shards across both TensorCores on v7x.
    grid = max(1, -(-n // tile_n))
    if grid == 1 and n > 8:
        grid = 2
    tile = _round_up(-(-n // grid), 8)
    grid = -(-n // tile)
    n_pad = grid * tile
    if n_pad != n:
        xp = jnp.pad(xp, ((0, n_pad - n), (0, 0)))

    # VMEM budget: double-buffered input/output tiles + resident weight/bias.
    # With the narrow (C_out-wide) output this is tiny on every generation
    # (well under v5e's 16 MiB scoped default and v7x's 64 MiB physical VMEM).
    tile_bytes = 4 * tile * (k_pad + c_out)
    weight_bytes = 4 * (k_pad + 1) * c_out
    vmem_limit = int(min(max(2 * tile_bytes + weight_bytes + (2 << 20), 4 << 20),
                         32 << 20))

    out = pl.pallas_call(
        _baseline_layer_kernel,
        out_shape=jax.ShapeDtypeStruct((n_pad, c_out), x.dtype),
        grid_spec=pltpu.PrefetchScalarGridSpec(
            num_scalar_prefetch=0,
            grid=(grid,),
            in_specs=[
                pl.BlockSpec((tile, k_pad), lambda i: (i, 0)),   # [x,pos] rows
                pl.BlockSpec((k_pad, c_out), lambda i: (0, 0)),  # fused W (resident)
                pl.BlockSpec((1, c_out), lambda i: (0, 0)),      # fused bias (resident)
            ],
            out_specs=pl.BlockSpec((tile, c_out), lambda i: (i, 0)),
        ),
        compiler_params=pltpu.CompilerParams(
            dimension_semantics=("parallel",),   # shard row tiles across TCs
            vmem_limit_bytes=vmem_limit,
        ),
    )(xp, w, b)
    return out[:n] if n_pad != n else out


def baseline_layer_forward(x, pos, fused, *, tile_n=2048,
                           min_pallas_rows=4096, force_pallas=False):
    """Forward pass of BaselineLayer using the fused parameters."""
    n, c_in = x.shape
    if (not force_pallas) and n < min_pallas_rows:
        # Small-N fallback: a plain XLA dot beats pallas_call launch overhead.
        xp = jnp.concatenate([x, pos], axis=1)
        return xp @ fused["w"][: xp.shape[1]] + fused["b"][0]
    return _baseline_layer_pallas(x, pos, fused["w"], fused["b"], tile_n=tile_n)


# ------------------------- parameter setup (glue) ---------------------------
def spectral_normalize(w, key, n_iters=30):
    """Divide w (out_features, in_features) by its estimated spectral norm.

    Mirrors torch.nn.utils.parametrizations.spectral_norm (power iteration),
    run once at init.  Plain JAX — parameter preprocessing, not the hot path.
    """
    out_f, _ = w.shape
    u = jax.random.normal(key, (out_f,), dtype=w.dtype)
    u = u / (jnp.linalg.norm(u) + 1e-12)
    v = None
    for _ in range(n_iters):
        v = w.T @ u
        v = v / (jnp.linalg.norm(v) + 1e-12)
        u = w @ v
        u = u / (jnp.linalg.norm(u) + 1e-12)
    sigma = u @ (w @ v)
    return w / sigma


def init_baseline_layer_params(key, in_channels, out_channels, num_dimensions,
                               spectral_norm=True, skip_connection=True):
    """Returns (raw params for the reference, fused params for the kernel)."""
    k1, k2, k3, k4, k5, k6 = jax.random.split(key, 6)

    fan_self = in_channels + num_dimensions
    bound_self = 1.0 / math.sqrt(fan_self)
    w_self = jax.random.uniform(k1, (out_channels, fan_self),
                                minval=-bound_self, maxval=bound_self,
                                dtype=jnp.float32)
    b_self = jax.random.uniform(k2, (out_channels,),
                                minval=-bound_self, maxval=bound_self,
                                dtype=jnp.float32)

    learnable_sc = skip_connection and (in_channels != out_channels)
    w_sc = b_sc = None
    if learnable_sc:
        bound_sc = 1.0 / math.sqrt(in_channels)
        w_sc = jax.random.uniform(k3, (out_channels, in_channels),
                                  minval=-bound_sc, maxval=bound_sc,
                                  dtype=jnp.float32)
        b_sc = jax.random.uniform(k4, (out_channels,),
                                  minval=-bound_sc, maxval=bound_sc,
                                  dtype=jnp.float32)

    if spectral_norm:
        # TODO(synk): PyTorch's spectral_norm updates u/v with one power
        # iteration on every training forward; here it is applied once at init
        # (exact for a frozen / inference model).
        w_self = spectral_normalize(w_self, k5)
        if learnable_sc:
            w_sc = spectral_normalize(w_sc, k6)

    # ---- fuse skip + self_nn into one (K, C_out) weight (one-time prep) ----
    w_full = w_self.T                          # (C_in + D, C_out)
    b = b_self
    if skip_connection:
        if learnable_sc:
            w_full = w_full.at[:in_channels].add(w_sc.T)
            b = b + b_sc
        else:
            w_full = w_full.at[:in_channels].add(
                jnp.eye(in_channels, out_channels, dtype=w_full.dtype))

    k_pad = _round_up(in_channels + num_dimensions, 8)
    w_full = jnp.pad(w_full, ((0, k_pad - (in_channels + num_dimensions)), (0, 0)))
    b = b.reshape(1, out_channels)

    raw = dict(w_self=w_self, b_self=b_self, w_sc=w_sc, b_sc=b_sc,
               skip_connection=skip_connection, learnable_sc=learnable_sc)
    fused = dict(w=w_full, b=b, out_channels=out_channels)
    return raw, fused


# ------------------------------- reference ----------------------------------
def baseline_layer_ref(x, pos, raw):
    xp = jnp.concatenate([x, pos], axis=1)
    out = xp @ raw["w_self"].T + raw["b_self"]
    if raw["skip_connection"]:
        if raw["learnable_sc"]:
            out = out + (x @ raw["w_sc"].T + raw["b_sc"])
        else:
            out = out + x
    return out


# --------------------------------- main --------------------------------------
if __name__ == "__main__":
    key = jax.random.PRNGKey(0)
    k_x, k_pos, k_param = jax.random.split(key, 3)

    # Small shapes: N points with in_channels features + num_dimensions coords.
    # N=300 with tile_n=128 -> balanced 3-step grid (tile=104) + row padding.
    N, C_IN, C_OUT, NUM_DIMS = 300, 4, 8, 3

    x = jax.random.normal(k_x, (N, C_IN), dtype=jnp.float32)
    pos = jax.random.normal(k_pos, (N, NUM_DIMS), dtype=jnp.float32)

    raw, fused = init_baseline_layer_params(k_param, C_IN, C_OUT, NUM_DIMS,
                                            spectral_norm=True,
                                            skip_connection=True)

    # Pallas path (forced so the kernel is exercised at this small N).
    out = baseline_layer_forward(x, pos, fused, tile_n=128, force_pallas=True)
    out = jax.block_until_ready(out)

    # Small-N XLA fallback path (what production would use at N=300).
    out_fb = jax.block_until_ready(baseline_layer_forward(x, pos, fused))

    ref = baseline_layer_ref(x, pos, raw)
    assert out.shape == (N, C_OUT)
    assert jnp.allclose(out, ref, atol=1e-5, rtol=1e-5), "pallas mismatch vs reference"
    assert jnp.allclose(out_fb, ref, atol=1e-5, rtol=1e-5), "fallback mismatch vs reference"

    print("KERNEL_OK")
</pallas_src>

<mosaic_0001>
module attributes {stable_mosaic.version = 11 : i64} {
  func.func @_baseline_layer_kernel(%arg0: i32, %arg1: memref<104x8xf32, #tpu.memory_space<vmem>>, %arg2: memref<8x8xf32, #tpu.memory_space<vmem>>, %arg3: memref<1x8xf32, #tpu.memory_space<vmem>>, %arg4: memref<104x8xf32, #tpu.memory_space<vmem>>) attributes {dimension_semantics = [#tpu.dimension_semantics<parallel>], iteration_bounds = array<i64: 3>, scalar_prefetch = 0 : i64, scratch_operands = 0 : i64, tpu.core_type = #tpu.core_type<tc>, window_params = [{transform_indices = @transform_0, window_bounds = array<i64: 104, 8>}, {pipeline_mode = #tpu.pipeline_mode<synchronous>, transform_indices = @transform_1, window_bounds = array<i64: 8, 8>}, {pipeline_mode = #tpu.pipeline_mode<synchronous>, transform_indices = @transform_2, window_bounds = array<i64: 1, 8>}, {transform_indices = @transform_3, window_bounds = array<i64: 104, 8>}]} {
    %c0 = arith.constant 0 : index
    %c0_0 = arith.constant 0 : index
    %0 = vector.load %arg1[%c0, %c0_0] : memref<104x8xf32, #tpu.memory_space<vmem>>, vector<104x8xf32>
    %c0_1 = arith.constant 0 : index
    %c0_2 = arith.constant 0 : index
    %1 = vector.load %arg2[%c0_1, %c0_2] : memref<8x8xf32, #tpu.memory_space<vmem>>, vector<8x8xf32>
    %cst = arith.constant dense<0.000000e+00> : vector<104x8xf32>
    %2 = tpu.matmul %0, %1, %cst {dimension_numbers = #tpu.dot_dimension_numbers<[1], [0], [0], [1], [0, 0, 1, 1], [], []>} : vector<104x8xf32>, vector<8x8xf32>, vector<104x8xf32> -> vector<104x8xf32>
    %c0_3 = arith.constant 0 : index
    %c0_4 = arith.constant 0 : index
    %3 = vector.load %arg3[%c0_3, %c0_4] : memref<1x8xf32, #tpu.memory_space<vmem>>, vector<1x8xf32>
    %4 = vector.broadcast %3 : vector<1x8xf32> to vector<104x8xf32>
    %5 = arith.addf %2, %4 : vector<104x8xf32>
    %c0_5 = arith.constant 0 : index
    %c0_6 = arith.constant 0 : index
    %6 = vector.load %arg4[%c0_5, %c0_6] : memref<104x8xf32, #tpu.memory_space<vmem>>, vector<104x8xf32>
    tpu.vector_store %arg4[%c0_5, %c0_6], %5 {strides = array<i32>} : memref<104x8xf32, #tpu.memory_space<vmem>>, vector<104x8xf32>,
    return
  }
  func.func @transform_0(%arg0: i32) -> (i32, i32) {
    %c0_i32 = arith.constant 0 : i32
    %c0_i32_0 = arith.constant 0 : i32
    return %arg0, %c0_i32 : i32, i32
  }
  func.func @transform_1(%arg0: i32) -> (i32, i32) {
    %c0_i32 = arith.constant 0 : i32
    %c0_i32_0 = arith.constant 0 : i32
    %c0_i32_1 = arith.constant 0 : i32
    return %c0_i32, %c0_i32_0 : i32, i32
  }
  func.func @transform_2(%arg0: i32) -> (i32, i32) {
    %c0_i32 = arith.constant 0 : i32
    %c0_i32_0 = arith.constant 0 : i32
    %c0_i32_1 = arith.constant 0 : i32
    return %c0_i32, %c0_i32_0 : i32, i32
  }
  func.func @transform_3(%arg0: i32) -> (i32, i32) {
    %c0_i32 = arith.constant 0 : i32
    %c0_i32_0 = arith.constant 0 : i32
    return %arg0, %c0_i32 : i32, i32
  }
}

</mosaic_0001>

<bundles_post_ra>
// kernel: _baseline_layer_pallas.1
= control target key start
LH: loop header
LB: loop body
LE: loop exit
PB: predicated region body
PF: predicated region fallthrough
CT: control target
= control target key end

     0   :  { %s554_s12 = smov 0   ;;  %s653_s0 = inlined_call_operand.vmem [shape: f32[312,8], index: 0, kind: input, shape index: {}]   ;;  %s654_s1 = inlined_call_operand.vmem [shape: f32[8,8], index: 1, kind: input, shape index: {}]   ;;  %s655_s2 = inlined_call_operand.vmem [shape: f32[1,8], index: 2, kind: input, shape index: {}]   ;;  %s656_s3 = inlined_call_operand.vmem [shape: f32[312,8], index: 3, kind: output, shape index: {}]  }
   0x1 LB: > { %s434_s13 = sadd.s32 4294967295, %s530_s12   ;;  %p438_p0 = scmp.ge.s32.totalorder %s530_s12, 1  ;;  %s530_s12 = sphi %s554_s12, %s13_s12  }
   0x2   : > { %p138_p1 = scmp.lt.s32.totalorder %s530_s12, 4 }
   0x4   : > { %p139_p2 = pnand %p438_p0, %p138_p1 }
   0x5   : > { %v187_v0 = vld [vmem:[%s654_s1] sm:$0xff] (!%p139_p2)  ;;  %s162_s16 = smul.u32 (!%p139_p2), 13, %s434_s13  ;;  %v532_v1 = vmov (!%p139_p2), 0.0   ;;  %vm533_vm0 = vmmov (!%p139_p2), 0   ;;  %vm195_vm1 = vcmask (!%p139_p2), 64512  }
   0x6   : > { %142 = sbr.rel (%p139_p2) target bundleno = 256 (0x100), region = 32  ;;  %471 = vmatprep.subr.mxu0 (!%p139_p2), %v532_v1  ;;  %473 = vmatprep.mubr.msk.f32.mxu0 (!%p139_p2), %vm533_vm0, %v532_v1  ;;  %v441_v15 = vld [vmem:[%s655_s2] ss:$0 sm:$0xff] (!%p139_p2) }
   0x7   : > { %472 = vmatpush3.msra.mxu0 (!%p139_p2), %v187_v0  ;;  %p163_p3 = scmp.lt.s32.totalorder (!%p139_p2), %s162_s16, 38  ;;  %512 = vmatprep.subr.mxu1 (!%p139_p2), %v532_v1 }
   0x8   : > { %513 = vmatpush3.msra.mxu1 (!%p139_p2), %v187_v0  ;;  %494 = vmatprep.mubr.msk.f32.mxu1 (!%p139_p2), %vm533_vm0, %v532_v1 }
   0xd   : > { %s658_s16 = smov (!%p163_p3, %s162_s16), 38 }
   0xe   : > { %s439_s17 = sshll.u32 %s658_s16, 3 }
   0xf   : > { %s575_s20 = scalar_lea.vmem %s653_s0, %s439_s17  ;;  %s622_s25 = scalar_lea.vmem %s656_s3, %s439_s17 }
  0x10   : > { %v174_v2 = vld [vmem:[%s575_s20] sm:$0xff]  ;;  %v181_v3 = vld [vmem:[%s575_s20 + $0x38] sm:$0xff]  ;;  %v175_v4 = vld [vmem:[%s575_s20 + $0x8] sm:$0xff] }
  0x11   : > { %474 = vmatmul.mubr.msk.f32.vlgmr.msra.gmra.mrb[0].mxu0 %vm195_vm1, %v174_v2  ;;  %495 = vmatmul.mubr.msk.f32.vlgmr.msra.gmra.mrb[0].mxu1 %vm195_vm1, %v181_v3  ;;  %v182_v5 = vld [vmem:[%s575_s20 + $0x40] sm:$0xff]  ;;  %v176_v6 = vld [vmem:[%s575_s20 + $0x10] sm:$0xff]  ;;  %v183_v7 = vld [vmem:[%s575_s20 + $0x48] sm:$0xff] }
  0x12   : > { %476 = vmatprep.mubr.msk.f32.mxu0 %vm533_vm0, %v532_v1  ;;  %497 = vmatprep.mubr.msk.f32.mxu1 %vm533_vm0, %v532_v1  ;;  %v177_v8 = vld [vmem:[%s575_s20 + $0x18] sm:$0xff]  ;;  %v184_v9 = vld [vmem:[%s575_s20 + $0x50] sm:$0xff]  ;;  %v178_v10 = vld [vmem:[%s575_s20 + $0x20] sm:$0xff] }
  0x13   : > { %v185_v11 = vld [vmem:[%s575_s20 + $0x58] sm:$0xff]  ;;  %v179_v12 = vld [vmem:[%s575_s20 + $0x28] sm:$0xff]  ;;  %v186_v13 = vld [vmem:[%s575_s20 + $0x60] sm:$0xff] }
  0x14   : > { %v180_v14 = vld [vmem:[%s575_s20 + $0x30] sm:$0xff] }
  0x15   : > { %477 = vmatmul.mubr.msk.f32.gmra.mrb[2].mxu0 %vm195_vm1, %v175_v4  ;;  %498 = vmatmul.mubr.msk.f32.gmra.mrb[2].mxu1 %vm195_vm1, %v182_v5 }
  0x16   : > { %479 = vmatprep.mubr.msk.f32.mxu0 %vm533_vm0, %v532_v1  ;;  %500 = vmatprep.mubr.msk.f32.mxu1 %vm533_vm0, %v532_v1 }
  0x19   : > { %480 = vmatmul.mubr.msk.f32.gmra.mrb[4].mxu0 %vm195_vm1, %v176_v6  ;;  %501 = vmatmul.mubr.msk.f32.gmra.mrb[4].mxu1 %vm195_vm1, %v183_v7 }
  0x1a   : > { %482 = vmatprep.mubr.msk.f32.mxu0 %vm533_vm0, %v532_v1  ;;  %503 = vmatprep.mubr.msk.f32.mxu1 %vm533_vm0, %v532_v1 }
  0x1d   : > { %483 = vmatmul.mubr.msk.f32.gmra.mrb[6].mxu0 %vm195_vm1, %v177_v8  ;;  %504 = vmatmul.mubr.msk.f32.gmra.mrb[6].mxu1 %vm195_vm1, %v184_v9 }
  0x1e   : > { %485 = vmatprep.mubr.msk.f32.mxu0 %vm533_vm0, %v532_v1  ;;  %506 = vmatprep.mubr.msk.f32.mxu1 %vm533_vm0, %v532_v1 }
  0x21   : > { %486 = vmatmul.mubr.msk.f32.gmra.mrb[8].mxu0 %vm195_vm1, %v178_v10  ;;  %507 = vmatmul.mubr.msk.f32.gmra.mrb[8].mxu1 %vm195_vm1, %v185_v11 }
  0x22   : > { %488 = vmatprep.mubr.msk.f32.mxu0 %vm533_vm0, %v532_v1  ;;  %509 = vmatprep.mubr.msk.f32.mxu1 %vm533_vm0, %v532_v1 }
  0x25   : > { %489 = vmatmul.mubr.msk.f32.gmra.mrb[10].mxu0 %vm195_vm1, %v179_v12  ;;  %510 = vmatmul.mubr.msk.f32.gmra.mrb[10].mxu1 %vm195_vm1, %v186_v13 }
  0x26   : > { %491 = vmatprep.mubr.msk.f32.mxu0 %vm533_vm0, %v532_v1 }
  0x29   : > { %492 = vmatmul.mubr.msk.f32.gmra.mrb[12].mxu0 %vm195_vm1, %v180_v14 }
  0xe4   : > { %v301_v16 = vpop.f32.mrb[0].mxu0  ;;  %v336_v17 = vpop.f32.mrb[0].mxu1 }
  0xe5   : > { %v302_v18 = vadd.f32 %v441_v15, %v301_v16  ;;  %v475_v19 = vpop.f32.mrb[1].mxu0  ;;  %v337_v20 = vadd.f32 %v441_v15, %v336_v17  ;;  %v496_v21 = vpop.f32.mrb[1].mxu1 }
  0xe7   : > { %365 = vst.msk [vmem:[%s622_s25] sm:$0xff] %vm195_vm1, %v302_v18  ;;  %372 = vst.msk [vmem:[%s622_s25 + $0x38] sm:$0xff] %vm195_vm1, %v337_v20 }
  0xe8   : > { %v306_v22 = vpop.f32.mrb[2].mxu0  ;;  %v341_v23 = vpop.f32.mrb[2].mxu1 }
  0xe9   : > { %v307_v24 = vadd.f32 %v441_v15, %v306_v22  ;;  %v478_v25 = vpop.f32.mrb[3].mxu0  ;;  %v342_v26 = vadd.f32 %v441_v15, %v341_v23  ;;  %v499_v27 = vpop.f32.mrb[3].mxu1 }
  0xeb   : > { %366 = vst.msk [vmem:[%s622_s25 + $0x8] sm:$0xff] %vm195_vm1, %v307_v24  ;;  %373 = vst.msk [vmem:[%s622_s25 + $0x40] sm:$0xff] %vm195_vm1, %v342_v26 }
  0xec   : > { %v311_v28 = vpop.f32.mrb[4].mxu0  ;;  %v346_v29 = vpop.f32.mrb[4].mxu1 }
  0xed   : > { %v312_v30 = vadd.f32 %v441_v15, %v311_v28  ;;  %v481_v31 = vpop.f32.mrb[5].mxu0  ;;  %v347_v32 = vadd.f32 %v441_v15, %v346_v29  ;;  %v502_v33 = vpop.f32.mrb[5].mxu1 }
  0xef   : > { %367 = vst.msk [vmem:[%s622_s25 + $0x10] sm:$0xff] %vm195_vm1, %v312_v30  ;;  %374 = vst.msk [vmem:[%s622_s25 + $0x48] sm:$0xff] %vm195_vm1, %v347_v32 }
  0xf0   : > { %v316_v34 = vpop.f32.mrb[6].mxu0  ;;  %v351_v35 = vpop.f32.mrb[6].mxu1 }
  0xf1   : > { %v317_v36 = vadd.f32 %v441_v15, %v316_v34  ;;  %v484_v37 = vpop.f32.mrb[7].mxu0  ;;  %v352_v38 = vadd.f32 %v441_v15, %v351_v35  ;;  %v505_v39 = vpop.f32.mrb[7].mxu1 }
  0xf3   : > { %368 = vst.msk [vmem:[%s622_s25 + $0x18] sm:$0xff] %vm195_vm1, %v317_v36  ;;  %375 = vst.msk [vmem:[%s622_s25 + $0x50] sm:$0xff] %vm195_vm1, %v352_v38 }
  0xf4   : > { %v321_v40 = vpop.f32.mrb[8].mxu0  ;;  %v356_v41 = vpop.f32.mrb[8].mxu1 }
  0xf5   : > { %v322_v42 = vadd.f32 %v441_v15, %v321_v40  ;;  %v487_v43 = vpop.f32.mrb[9].mxu0  ;;  %v357_v44 = vadd.f32 %v441_v15, %v356_v41  ;;  %v508_v45 = vpop.f32.mrb[9].mxu1 }
  0xf7   : > { %369 = vst.msk [vmem:[%s622_s25 + $0x20] sm:$0xff] %vm195_vm1, %v322_v42  ;;  %376 = vst.msk [vmem:[%s622_s25 + $0x58] sm:$0xff] %vm195_vm1, %v357_v44 }
  0xf8   : > { %v326_v46 = vpop.f32.mrb[10].mxu0  ;;  %v361_v47 = vpop.f32.mrb[10].mxu1 }
  0xf9   : > { %v327_v48 = vadd.f32 %v441_v15, %v326_v46  ;;  %v490_v49 = vpop.f32.mrb[11].mxu0  ;;  %v362_v50 = vadd.f32 %v441_v15, %v361_v47  ;;  %v511_v51 = vpop.f32.mrb[11].mxu1 }
  0xfb   : > { %370 = vst.msk [vmem:[%s622_s25 + $0x28] sm:$0xff] %vm195_vm1, %v327_v48  ;;  %377 = vst.msk [vmem:[%s622_s25 + $0x60] sm:$0xff] %vm195_vm1, %v362_v50 }
  0xfc   : > { %v331_v52 = vpop.f32.mrb[12].mxu0 }
  0xfd   : > { %v332_v53 = vadd.f32 %v441_v15, %v331_v52  ;;  %v493_v54 = vpop.f32.mrb[13].mxu0 }
  0xff   : > { %371 = vst.msk [vmem:[%s622_s25 + $0x30] sm:$0xff] %vm195_vm1, %v332_v53 }
 0x100 PF: > { %s13_s12 = sadd.s32 1, %s530_s12  }
 0x101   : > { %p10_p4 = scmp.ge.s32.totalorder %s13_s12, 5  }
 0x103   :  { %12 = sbr.rel (!%p10_p4) target bundleno = 1 (0x1), region = 62 }

</bundles_post_ra>
